<compile_context>
chip_gen: v7x
topology: tpu7x:2x2x1
jax: 0.10.0
libtpu: 0.0.40
codegen_flags: <defaults>
</compile_context>

<pallas_src>
import numpy as np
import jax
import jax.numpy as jnp
from jax.experimental import pallas as pl
from jax.experimental.pallas import tpu as pltpu

_LANE = 128
_EPS = 1e-5   # python float -> baked constant, not a captured array


# ----------------------------------------------------------------------------
# Fused kernel: whole Generator stack, single pallas_call, two inputs
# ----------------------------------------------------------------------------
def _make_fused_kernel(n_res, batch):
    """p_ref layout (all f32, 128 lanes wide):
         rows [k*128 : (k+1)*128)            : weight of layer k (row-permuted to the
                                               concat-buffer lane layout, output columns
                                               pre-placed at the new segment's lanes)
         rows [vbase + k*8 : vbase + k*8 + 8): vector block of layer k
                                               (row 0 = bias, 1 = gamma, 2 = beta, rest 0)
       Layer indices k = 0..n_res-1 are residual blocks, k = n_res is the final Linear.
    """
    inv_b = 1.0 / float(batch)          # python float (no captured jnp constant)
    n_layers = n_res + 1
    vbase = n_layers * _LANE

    def kernel(p_ref, x_ref, out_ref):
        h = x_ref[...]                                   # (B, 128), lanes [E:128) are 0

        for k in range(n_res):                           # residual blocks
            wo = k * _LANE
            vo = vbase + k * 8
            w = p_ref[wo:wo + _LANE, :]                  # (128, 128)
            vec = p_ref[vo:vo + 8, :]                    # (8, 128) aligned load
            b, gamma, beta = vec[0:1, :], vec[1:2, :], vec[2:3, :]

            y = jnp.dot(h, w, preferred_element_type=jnp.float32) + b

            # BatchNorm1d training-mode forward (batch mean, biased variance).
            mean = jnp.sum(y, axis=0, keepdims=True) * inv_b
            yc = y - mean
            var = jnp.sum(yc * yc, axis=0, keepdims=True) * inv_b
            scale = gamma * jax.lax.rsqrt(var + _EPS)    # folded affine
            shift = beta - mean * scale

            # New segment lands exactly in its own (previously all-zero) lane slice,
            # every other lane of the relu output is exactly 0 -> add == concat.
            h = h + jnp.maximum(y * scale + shift, 0.0)

        # Final Linear
        wo = n_res * _LANE
        vo = vbase + n_res * 8
        w = p_ref[wo:wo + _LANE, :]
        b = p_ref[vo:vo + 1, :]
        out_ref[...] = jnp.dot(h, w, preferred_element_type=jnp.float32) + b

    return kernel


# ----------------------------------------------------------------------------
# Parameter init (mirrors nn.Linear U(-1/sqrt(in), 1/sqrt(in)), BN gamma=1 beta=0)
# ----------------------------------------------------------------------------
def init_generator_params(key, embedding_dim, gen_dims, data_dim):
    params = {"embedding_dim": embedding_dim, "gen_dims": tuple(gen_dims),
              "data_dim": data_dim, "layers": []}
    dim = embedding_dim
    for item in gen_dims:
        key, k1, k2 = jax.random.split(key, 3)
        bound = 1.0 / (dim ** 0.5)
        w = jax.random.uniform(k1, (dim, item), jnp.float32, -bound, bound)
        b = jax.random.uniform(k2, (item,), jnp.float32, -bound, bound)
        params["layers"].append({"kind": "residual", "w": w, "b": b,
                                 "gamma": jnp.ones((item,), jnp.float32),
                                 "beta": jnp.zeros((item,), jnp.float32)})
        dim += item
    key, k1, k2 = jax.random.split(key, 3)
    bound = 1.0 / (dim ** 0.5)
    w = jax.random.uniform(k1, (dim, data_dim), jnp.float32, -bound, bound)
    b = jax.random.uniform(k2, (data_dim,), jnp.float32, -bound, bound)
    params["layers"].append({"kind": "linear", "w": w, "b": b})
    return params


# ----------------------------------------------------------------------------
# One-time packing: everything into ONE (rows, 128) f32 slab.
# Weight rows are permuted from PyTorch concat order ([out_{k-1},...,out_1,x]) to the
# fixed lane layout of the concat buffer ([x, out_1, out_2, ...]); output columns are
# scattered into the new segment's lane slice so no lane shuffle is needed in-kernel.
# ----------------------------------------------------------------------------
def pack_generator_params(params):
    E = params["embedding_dim"]
    gen_dims = list(params["gen_dims"])
    D = params["data_dim"]
    n_res = len(gen_dims)

    assert E + sum(gen_dims) <= _LANE, "concat width must fit in 128 lanes"
    assert D <= _LANE and all(d <= _LANE for d in gen_dims)

    # lane offset of each segment in the (B,128) concat buffer
    seg_off = [0]                      # segment 0 = x
    off = E
    for d in gen_dims:
        seg_off.append(off)
        off += d
    seg_dims = [E] + gen_dims

    n_layers = n_res + 1
    vbase = n_layers * _LANE
    P = np.zeros((vbase + n_layers * 8, _LANE), np.float32)

    def scatter_weight(w_np, k_segments, out_off, out_dim, dst_row_base):
        # PyTorch row order of w: [seg_{k_segments-1}, ..., seg_1, seg_0(=x)]
        row = 0
        for s in range(k_segments - 1, -1, -1):
            d = seg_dims[s]
            P[dst_row_base + seg_off[s]: dst_row_base + seg_off[s] + d,
              out_off: out_off + out_dim] = w_np[row:row + d, :]
            row += d

    layers = params["layers"]
    for k in range(1, n_res + 1):
        layer = layers[k - 1]
        d_k = gen_dims[k - 1]
        scatter_weight(np.asarray(layer["w"]), k, seg_off[k], d_k, (k - 1) * _LANE)
        vo = vbase + (k - 1) * 8
        P[vo,     seg_off[k]:seg_off[k] + d_k] = np.asarray(layer["b"])
        P[vo + 1, seg_off[k]:seg_off[k] + d_k] = np.asarray(layer["gamma"])
        P[vo + 2, seg_off[k]:seg_off[k] + d_k] = np.asarray(layer["beta"])

    final = layers[-1]
    scatter_weight(np.asarray(final["w"]), n_res + 1, 0, D, n_res * _LANE)
    P[vbase + n_res * 8, 0:D] = np.asarray(final["b"])

    meta = {"n_res": n_res, "embedding_dim": E, "data_dim": D}
    return jnp.asarray(P), meta


# ----------------------------------------------------------------------------
# Jitted wrapper: pad -> one pallas_call -> slice (pad/slice fuse under jit)
# ----------------------------------------------------------------------------
def build_generator_forward(meta):
    E, D, n_res = meta["embedding_dim"], meta["data_dim"], meta["n_res"]

    @jax.jit
    def forward(packed, x):
        B = x.shape[0]
        x_pad = jnp.pad(x.astype(jnp.float32), ((0, 0), (0, _LANE - E)))
        kernel = _make_fused_kernel(n_res, B)
        vmem = pl.BlockSpec(memory_space=pltpu.MemorySpace.VMEM)
        out_pad = pl.pallas_call(
            kernel,
            out_shape=jax.ShapeDtypeStruct((B, _LANE), jnp.float32),
            in_specs=[vmem, vmem],
            out_specs=vmem,
        )(packed, x_pad)
        return out_pad[:, :D]

    return forward


# ----------------------------------------------------------------------------
# Pure-JAX reference (same forward math, no Pallas, no padding)
# ----------------------------------------------------------------------------
def _reference_forward(params, x):
    h = x
    for p in params["layers"]:
        if p["kind"] == "residual":
            y = jnp.dot(h, p["w"], precision=jax.lax.Precision.HIGHEST) + p["b"]
            mean = jnp.mean(y, axis=0, keepdims=True)
            var = jnp.mean((y - mean) ** 2, axis=0, keepdims=True)
            y = (y - mean) * jax.lax.rsqrt(var + _EPS)
            y = y * p["gamma"] + p["beta"]
            y = jnp.maximum(y, 0.0)
            h = jnp.concatenate([y, h], axis=1)
        else:
            h = jnp.dot(h, p["w"], precision=jax.lax.Precision.HIGHEST) + p["b"]
    return h


# ----------------------------------------------------------------------------
if __name__ == "__main__":
    batch = 8                     # sublane-aligned; BN stats use the full batch
    embedding_dim = 32
    gen_dims = (32, 32)
    data_dim = 16

    key = jax.random.PRNGKey(0)
    key, pkey, xkey = jax.random.split(key, 3)
    params = init_generator_params(pkey, embedding_dim, gen_dims, data_dim)
    packed, meta = pack_generator_params(params)
    forward = build_generator_forward(meta)

    x = jax.random.normal(xkey, (batch, embedding_dim), jnp.float32)

    out = forward(packed, x)
    out = jax.block_until_ready(out)

    ref = _reference_forward(params, x)
    assert out.shape == (batch, data_dim), out.shape
    max_err = float(jnp.max(jnp.abs(out - ref)))
    assert jnp.allclose(out, ref, atol=5e-4, rtol=5e-4), (
        "mismatch vs reference, max abs err = %g" % max_err)

    # TODO(synk): BatchNorm1d running_mean/running_var buffer updates (training-mode
    # side effect) are not reproduced; only the forward output is.
    print("KERNEL_OK")
</pallas_src>

<mosaic_0001>
module attributes {stable_mosaic.version = 11 : i64} {
  func.func @kernel(%arg0: memref<408x128xf32, #tpu.memory_space<vmem>>, %arg1: memref<8x128xf32, #tpu.memory_space<vmem>>, %arg2: memref<8x128xf32, #tpu.memory_space<vmem>>) attributes {dimension_semantics = [], scalar_prefetch = 0 : i64, scratch_operands = 0 : i64, tpu.core_type = #tpu.core_type<tc>} {
    %c0 = arith.constant 0 : index
    %c0_0 = arith.constant 0 : index
    %0 = vector.load %arg1[%c0, %c0_0] : memref<8x128xf32, #tpu.memory_space<vmem>>, vector<8x128xf32>
    %c0_1 = arith.constant 0 : index
    %c0_2 = arith.constant 0 : index
    %1 = vector.load %arg0[%c0_1, %c0_2] : memref<408x128xf32, #tpu.memory_space<vmem>>, vector<128x128xf32>
    %c384 = arith.constant 384 : index
    %c0_3 = arith.constant 0 : index
    %2 = vector.load %arg0[%c384, %c0_3] : memref<408x128xf32, #tpu.memory_space<vmem>>, vector<8x128xf32>
    %3 = vector.extract_strided_slice %2 {offsets = [0, 0], sizes = [1, 128], strides = [1, 1]} : vector<8x128xf32> to vector<1x128xf32>
    %4 = vector.extract_strided_slice %2 {offsets = [1, 0], sizes = [1, 128], strides = [1, 1]} : vector<8x128xf32> to vector<1x128xf32>
    %5 = vector.extract_strided_slice %2 {offsets = [2, 0], sizes = [1, 128], strides = [1, 1]} : vector<8x128xf32> to vector<1x128xf32>
    %cst = arith.constant dense<0.000000e+00> : vector<8x128xf32>
    %6 = tpu.matmul %0, %1, %cst {dimension_numbers = #tpu.dot_dimension_numbers<[1], [0], [0], [1], [0, 0, 1, 1], [], []>} : vector<8x128xf32>, vector<128x128xf32>, vector<8x128xf32> -> vector<8x128xf32>
    %7 = vector.broadcast %3 : vector<1x128xf32> to vector<8x128xf32>
    %8 = arith.addf %6, %7 : vector<8x128xf32>
    %cst_4 = arith.constant dense<0.000000e+00> : vector<128xf32>
    %9 = vector.multi_reduction <add>, %8, %cst_4 [0] : vector<8x128xf32> to vector<128xf32>
    %10 = vector.shape_cast %9 : vector<128xf32> to vector<1x128xf32>
    %cst_5 = arith.constant 1.250000e-01 : f32
    %11 = vector.broadcast %cst_5 : f32 to vector<1x128xf32>
    %12 = arith.mulf %10, %11 : vector<1x128xf32>
    %13 = vector.broadcast %12 : vector<1x128xf32> to vector<8x128xf32>
    %14 = arith.subf %8, %13 : vector<8x128xf32>
    %15 = arith.mulf %14, %14 : vector<8x128xf32>
    %cst_6 = arith.constant dense<0.000000e+00> : vector<128xf32>
    %16 = vector.multi_reduction <add>, %15, %cst_6 [0] : vector<8x128xf32> to vector<128xf32>
    %17 = vector.shape_cast %16 : vector<128xf32> to vector<1x128xf32>
    %cst_7 = arith.constant 1.250000e-01 : f32
    %18 = vector.broadcast %cst_7 : f32 to vector<1x128xf32>
    %19 = arith.mulf %17, %18 : vector<1x128xf32>
    %cst_8 = arith.constant 9.99999974E-6 : f32
    %20 = vector.broadcast %cst_8 : f32 to vector<1x128xf32>
    %21 = arith.addf %19, %20 : vector<1x128xf32>
    %22 = math.rsqrt %21 : vector<1x128xf32>
    %23 = arith.mulf %4, %22 : vector<1x128xf32>
    %24 = arith.mulf %12, %23 : vector<1x128xf32>
    %25 = arith.subf %5, %24 : vector<1x128xf32>
    %26 = vector.broadcast %23 : vector<1x128xf32> to vector<8x128xf32>
    %27 = arith.mulf %8, %26 : vector<8x128xf32>
    %28 = vector.broadcast %25 : vector<1x128xf32> to vector<8x128xf32>
    %29 = arith.addf %27, %28 : vector<8x128xf32>
    %cst_9 = arith.constant 0.000000e+00 : f32
    %30 = vector.broadcast %cst_9 : f32 to vector<8x128xf32>
    %31 = arith.maximumf %29, %30 : vector<8x128xf32>
    %32 = arith.addf %0, %31 : vector<8x128xf32>
    %c128 = arith.constant 128 : index
    %c0_10 = arith.constant 0 : index
    %33 = vector.load %arg0[%c128, %c0_10] : memref<408x128xf32, #tpu.memory_space<vmem>>, vector<128x128xf32>
    %c392 = arith.constant 392 : index
    %c0_11 = arith.constant 0 : index
    %34 = vector.load %arg0[%c392, %c0_11] : memref<408x128xf32, #tpu.memory_space<vmem>>, vector<8x128xf32>
    %35 = vector.extract_strided_slice %34 {offsets = [0, 0], sizes = [1, 128], strides = [1, 1]} : vector<8x128xf32> to vector<1x128xf32>
    %36 = vector.extract_strided_slice %34 {offsets = [1, 0], sizes = [1, 128], strides = [1, 1]} : vector<8x128xf32> to vector<1x128xf32>
    %37 = vector.extract_strided_slice %34 {offsets = [2, 0], sizes = [1, 128], strides = [1, 1]} : vector<8x128xf32> to vector<1x128xf32>
    %cst_12 = arith.constant dense<0.000000e+00> : vector<8x128xf32>
    %38 = tpu.matmul %32, %33, %cst_12 {dimension_numbers = #tpu.dot_dimension_numbers<[1], [0], [0], [1], [0, 0, 1, 1], [], []>} : vector<8x128xf32>, vector<128x128xf32>, vector<8x128xf32> -> vector<8x128xf32>
    %39 = vector.broadcast %35 : vector<1x128xf32> to vector<8x128xf32>
    %40 = arith.addf %38, %39 : vector<8x128xf32>
    %cst_13 = arith.constant dense<0.000000e+00> : vector<128xf32>
    %41 = vector.multi_reduction <add>, %40, %cst_13 [0] : vector<8x128xf32> to vector<128xf32>
    %42 = vector.shape_cast %41 : vector<128xf32> to vector<1x128xf32>
    %cst_14 = arith.constant 1.250000e-01 : f32
    %43 = vector.broadcast %cst_14 : f32 to vector<1x128xf32>
    %44 = arith.mulf %42, %43 : vector<1x128xf32>
    %45 = vector.broadcast %44 : vector<1x128xf32> to vector<8x128xf32>
    %46 = arith.subf %40, %45 : vector<8x128xf32>
    %47 = arith.mulf %46, %46 : vector<8x128xf32>
    %cst_15 = arith.constant dense<0.000000e+00> : vector<128xf32>
    %48 = vector.multi_reduction <add>, %47, %cst_15 [0] : vector<8x128xf32> to vector<128xf32>
    %49 = vector.shape_cast %48 : vector<128xf32> to vector<1x128xf32>
    %cst_16 = arith.constant 1.250000e-01 : f32
    %50 = vector.broadcast %cst_16 : f32 to vector<1x128xf32>
    %51 = arith.mulf %49, %50 : vector<1x128xf32>
    %cst_17 = arith.constant 9.99999974E-6 : f32
    %52 = vector.broadcast %cst_17 : f32 to vector<1x128xf32>
    %53 = arith.addf %51, %52 : vector<1x128xf32>
    %54 = math.rsqrt %53 : vector<1x128xf32>
    %55 = arith.mulf %36, %54 : vector<1x128xf32>
    %56 = arith.mulf %44, %55 : vector<1x128xf32>
    %57 = arith.subf %37, %56 : vector<1x128xf32>
    %58 = vector.broadcast %55 : vector<1x128xf32> to vector<8x128xf32>
    %59 = arith.mulf %40, %58 : vector<8x128xf32>
    %60 = vector.broadcast %57 : vector<1x128xf32> to vector<8x128xf32>
    %61 = arith.addf %59, %60 : vector<8x128xf32>
    %cst_18 = arith.constant 0.000000e+00 : f32
    %62 = vector.broadcast %cst_18 : f32 to vector<8x128xf32>
    %63 = arith.maximumf %61, %62 : vector<8x128xf32>
    %64 = arith.addf %32, %63 : vector<8x128xf32>
    %c256 = arith.constant 256 : index
    %c0_19 = arith.constant 0 : index
    %65 = vector.load %arg0[%c256, %c0_19] : memref<408x128xf32, #tpu.memory_space<vmem>>, vector<128x128xf32>
    %c400 = arith.constant 400 : index
    %c0_20 = arith.constant 0 : index
    %66 = vector.load %arg0[%c400, %c0_20] : memref<408x128xf32, #tpu.memory_space<vmem>>, vector<1x128xf32>
    %cst_21 = arith.constant dense<0.000000e+00> : vector<8x128xf32>
    %67 = tpu.matmul %64, %65, %cst_21 {dimension_numbers = #tpu.dot_dimension_numbers<[1], [0], [0], [1], [0, 0, 1, 1], [], []>} : vector<8x128xf32>, vector<128x128xf32>, vector<8x128xf32> -> vector<8x128xf32>
    %68 = vector.broadcast %66 : vector<1x128xf32> to vector<8x128xf32>
    %69 = arith.addf %67, %68 : vector<8x128xf32>
    %c0_22 = arith.constant 0 : index
    %c0_23 = arith.constant 0 : index
    %70 = vector.load %arg2[%c0_22, %c0_23] : memref<8x128xf32, #tpu.memory_space<vmem>>, vector<8x128xf32>
    tpu.vector_store %arg2[%c0_22, %c0_23], %69 {strides = array<i32>} : memref<8x128xf32, #tpu.memory_space<vmem>>, vector<8x128xf32>,
    return
  }
}

</mosaic_0001>

<bundles_post_ra>
// kernel: forward.1
= control target key start
LH: loop header
LB: loop body
LE: loop exit
PB: predicated region body
PF: predicated region fallthrough
CT: control target
= control target key end

     0   :  { %7 = vsyncpa [#allocation3], 0  ;;  %s777_s0 = inlined_call_operand.hbm [shape: f32[408,128], index: 0, kind: input, shape index: {}]   ;;  %s778_s1 = inlined_call_operand.vmem [shape: f32[8,128], index: 1, kind: input, shape index: {}]   ;;  %s779_s2 = inlined_call_operand.hbm [shape: f32[8,128], index: 2, kind: output, shape index: {}]  }
   0x1   :  { %8 = vsyncpa [#allocation4], 0  ;;  %s676_s9 = smov [#allocation2]   ;;  %s628_s13 = scalar_lea.hbm %s777_s0, 6528 }
   0x2   :  { %s14_s10 = sshll.u32 %s676_s9, 4  ;;  %p629_p0 = scmp.ne.s32.totalorder %s777_s0, %s628_s13  ;;  %s15_s10 = int_to_ptr.vmem [resolvable:$true] %s14_s10 }
   0x3   :  { %p632_p1 = scmp.lt.u32.totalorder %s628_s13, %s777_s0 }
   0x5   :  { %p634_p2 = pnand %p632_p1, %p629_p0 }
   0x7   :  { %637 = shalt.err (!%p634_p2)
}
   0x8   :  { %s638_s18 = scalar_lea.vmem %s15_s10, 6528  ;;  %p643_p4 = scmp.lt.s32.totalorder %s15_s10, %s15_s10 }
   0x9   :  { %p639_p3 = scmp.ne.s32.totalorder %s15_s10, %s638_s18  ;;  %p644_p5 = scmp.lt.s32.totalorder %s638_s18, %s638_s18 }
   0xb   :  { %p645_p6 = por %p644_p5, %p643_p4 }
   0xd   :  { %p646_p7 = pnand %p645_p6, %p639_p3 }
   0xf   :  { %649 = shalt.err (!%p646_p7)
}
  0x10   :  { %s677_s19 = smov 128   ;;  %s678_s20 = smov 8  }
  0x11   :  { %20 = dma.hbm_to_vmem [thread:$0]  %s777_s0, 6528, %s15_s10, [#allocation3], %s677_s19, %s677_s19, %s678_s20  }
  0x12   :  { %672 = dma.done.wait [#allocation3], 6528  }
  0x13   :  { %673 = vsyncadd [#allocation3], 4294960768  ;;  %v679_v0 = vmov 0.0|0.0   ;;  %vm680_vm0 = vmmov 0   ;;  %v681_v1 = vmov 0.0   ;;  %v27_v2 = vld [vmem:[#allocation2] sm:$0xff]  ;;  %v44_v51 = vlaneseq }
  0x14   :  { %545 = vmatprep.subr.bf16.mxu0 %v679_v0  ;;  %472 = vmatprep.mubr.msk.f32.mxu0 %vm680_vm0, %v681_v1  ;;  %v28_v3 = vld [vmem:[#allocation2 + $0x8] sm:$0xff]  ;;  %v29_v4 = vld [vmem:[#allocation2 + $0x10] sm:$0xff]  ;;  %v30_v6 = vld [vmem:[#allocation2 + $0x18] sm:$0xff] }
  0x15   :  { %569 = vmatprep.subr.bf16.mxu1 %v679_v0  ;;  %507 = vmatprep.mubr.msk.f32.mxu1 %vm680_vm0, %v681_v1  ;;  %v546_v5 = vpack.c.bf16 %v28_v3, %v27_v2  ;;  %v549_v7 = vpack.c.bf16 %v30_v6, %v29_v4  ;;  %v31_v8 = vld [vmem:[#allocation2 + $0x20] sm:$0xff]  ;;  %v32_v9 = vld [vmem:[#allocation2 + $0x28] sm:$0xff]  ;;  %v33_v11 = vld [vmem:[#allocation2 + $0x30] sm:$0xff]  ;;  %v736_v52 = vshrl.u32 %v44_v51, 7 }
  0x16   :  { %v552_v10 = vpack.c.bf16 %v32_v9, %v31_v8  ;;  %v34_v12 = vld [vmem:[#allocation2 + $0x38] sm:$0xff]  ;;  %v35_v14 = vld [vmem:[#allocation2 + $0x40] sm:$0xff]  ;;  %v36_v15 = vld [vmem:[#allocation2 + $0x48] sm:$0xff] }
  0x17   :  { %547 = vmatpush3.bf16.msra.mxu0 %v546_v5  ;;  %v555_v13 = vpack.c.bf16 %v34_v12, %v33_v11  ;;  %v558_v16 = vpack.c.bf16 %v36_v15, %v35_v14  ;;  %v37_v17 = vld [vmem:[#allocation2 + $0x50] sm:$0xff]  ;;  %v38_v18 = vld [vmem:[#allocation2 + $0x58] sm:$0xff]  ;;  %v39_v20 = vld [vmem:[#allocation2 + $0x60] sm:$0xff]  ;;  %v46_v53 = vsub.s32 0, %v736_v52  ;;  %v144_v15 = vsub.s32 1, %v736_v52 }
  0x18   :  { %548 = vmatprep.subr.bf16.mxu0 %v679_v0  ;;  %v561_v19 = vpack.c.bf16 %v38_v18, %v37_v17  ;;  %v40_v21 = vld [vmem:[#allocation2 + $0x68] sm:$0xff]  ;;  %v41_v23 = vld [vmem:[#allocation2 + $0x70] sm:$0xff]  ;;  %v42_v24 = vld [vmem:[#allocation2 + $0x78] sm:$0xff] }
  0x19   :  { %v564_v22 = vpack.c.bf16 %v40_v21, %v39_v20  ;;  %v567_v25 = vpack.c.bf16 %v42_v24, %v41_v23  ;;  %v724_v26 = vld [vmem:[%s778_s1] sm:$0xff]  ;;  %v155_v28 = vld [vmem:[#allocation2 + $0x88] sm:$0xff]  ;;  %v156_v30 = vld [vmem:[#allocation2 + $0x90] sm:$0xff]  ;;  %s682_s1 = smov [#allocation5]  }
  0x1a   :  { %v154_v27 = vld [vmem:[#allocation2 + $0x80] sm:$0xff]  ;;  %v157_v31 = vld [vmem:[#allocation2 + $0x98] sm:$0xff]  ;;  %v159_v34 = vld [vmem:[#allocation2 + $0xa8] sm:$0xff]  ;;  %s379_s24 = sshll.u32 %s682_s1, 4  ;;  %s380_s24 = int_to_ptr.vmem [resolvable:$true] %s379_s24 }
  0x1b   :  { %550 = vmatpush3.bf16.msra.mxu0 %v549_v7  ;;  %v570_v29 = vpack.c.bf16 %v155_v28, %v154_v27  ;;  %v573_v32 = vpack.c.bf16 %v157_v31, %v156_v30  ;;  %v158_v33 = vld [vmem:[#allocation2 + $0xa0] sm:$0xff]  ;;  %v160_v36 = vld [vmem:[#allocation2 + $0xb0] sm:$0xff]  ;;  %v161_v37 = vld [vmem:[#allocation2 + $0xb8] sm:$0xff]  ;;  %s650_s25 = scalar_lea.vmem %s380_s24, 128  ;;  %p655_p9 = scmp.lt.s32.totalorder %s380_s24, %s380_s24 }
  0x1c   :  { %551 = vmatprep.subr.bf16.mxu0 %v679_v0  ;;  %v576_v35 = vpack.c.bf16 %v159_v34, %v158_v33  ;;  %v579_v38 = vpack.c.bf16 %v161_v37, %v160_v36  ;;  %v162_v39 = vld [vmem:[#allocation2 + $0xc0] sm:$0xff]  ;;  %v163_v40 = vld [vmem:[#allocation2 + $0xc8] sm:$0xff]  ;;  %v164_v42 = vld [vmem:[#allocation2 + $0xd0] sm:$0xff]  ;;  %p651_p8 = scmp.ne.s32.totalorder %s380_s24, %s650_s25  ;;  %p656_p10 = scmp.lt.s32.totalorder %s650_s25, %s650_s25 }
  0x1d   :  { %571 = vmatpush3.bf16.msra.mxu1 %v570_v29  ;;  %v582_v41 = vpack.c.bf16 %v163_v40, %v162_v39  ;;  %v165_v43 = vld [vmem:[#allocation2 + $0xd8] sm:$0xff]  ;;  %v166_v45 = vld [vmem:[#allocation2 + $0xe0] sm:$0xff]  ;;  %v167_v46 = vld [vmem:[#allocation2 + $0xe8] sm:$0xff] }
  0x1e   :  { %572 = vmatprep.subr.bf16.mxu1 %v679_v0  ;;  %v585_v44 = vpack.c.bf16 %v165_v43, %v164_v42  ;;  %v168_v47 = vld [vmem:[#allocation2 + $0xf0] sm:$0xff]  ;;  %v588_v48 = vpack.c.bf16 %v167_v46, %v166_v45  ;;  %v169_v49 = vld [vmem:[#allocation2 + $0xf8] sm:$0xff]  ;;  %v43_v54 = vld [vmem:[#allocation2 + $0x180] sm:$0xff]  ;;  %p657_p11 = por %p656_p10, %p655_p9 }
  0x1f   :  { %553 = vmatpush3.bf16.msra.mxu0 %v552_v10  ;;  %v591_v50 = vpack.c.bf16 %v169_v49, %v168_v47  ;;  %v47_v55 = vrot.slane %v43_v54, %v46_v53  ;;  %v281_v27 = vld [vmem:[#allocation2 + $0x100] sm:$0xff]  ;;  %v282_v28 = vld [vmem:[#allocation2 + $0x108] sm:$0xff]  ;;  %v283_v30 = vld [vmem:[#allocation2 + $0x110] sm:$0xff] }
  0x20   :  { %554 = vmatprep.subr.bf16.mxu0 %v679_v0  ;;  %v594_v29 = vpack.c.bf16 %v282_v28, %v281_v27  ;;  %v284_v31 = vld [vmem:[#allocation2 + $0x118] sm:$0xff]  ;;  %v285_v33 = vld [vmem:[#allocation2 + $0x120] sm:$0xff]  ;;  %v286_v34 = vld [vmem:[#allocation2 + $0x128] sm:$0xff]  ;;  %p658_p12 = pnand %p657_p11, %p651_p8 }
  0x21   :  { %574 = vmatpush3.bf16.msra.mxu1 %v573_v32  ;;  %v597_v32 = vpack.c.bf16 %v284_v31, %v283_v30  ;;  %v288_v36 = vld [vmem:[#allocation2 + $0x138] sm:$0xff]  ;;  %v290_v39 = vld [vmem:[#allocation2 + $0x148] sm:$0xff]  ;;  %v295_v47 = vld [vmem:[#allocation2 + $0x170] sm:$0xff] }
  0x22   :  { %575 = vmatprep.subr.bf16.mxu1 %v679_v0  ;;  %v292_v42 = vld [vmem:[#allocation2 + $0x158] sm:$0xff]  ;;  %v294_v45 = vld [vmem:[#allocation2 + $0x168] sm:$0xff] }
  0x23   :  { %556 = vmatpush3.bf16.msra.mxu0 %v555_v13 }
  0x24   :  { %557 = vmatprep.subr.bf16.mxu0 %v679_v0 }
  0x25   :  { %577 = vmatpush3.bf16.msra.mxu1 %v576_v35  ;;  %v600_v35 = vpack.c.bf16 %v286_v34, %v285_v33 }
  0x26   :  { %578 = vmatprep.subr.bf16.mxu1 %v679_v0 }
  0x27   :  { %559 = vmatpush3.bf16.msra.mxu0 %v558_v16 }
  0x28   :  { %560 = vmatprep.subr.bf16.mxu0 %v679_v0 }
  0x29   :  { %580 = vmatpush3.bf16.msra.mxu1 %v579_v38  ;;  %v289_v38 = vld [vmem:[#allocation2 + $0x140] sm:$0xff] }
  0x2a   :  { %581 = vmatprep.subr.bf16.mxu1 %v679_v0  ;;  %v606_v40 = vpack.c.bf16 %v290_v39, %v289_v38 }
  0x2b   :  { %562 = vmatpush3.bf16.msra.mxu0 %v561_v19  ;;  %v149_v19 = vsub.s32 2, %v736_v52 }
  0x2c   :  { %563 = vmatprep.subr.bf16.mxu0 %v679_v0 }
  0x2d   :  { %583 = vmatpush3.bf16.msra.mxu1 %v582_v41  ;;  %v291_v41 = vld [vmem:[#allocation2 + $0x150] sm:$0xff] }
  0x2e   :  { %584 = vmatprep.subr.bf16.mxu1 %v679_v0  ;;  %v609_v43 = vpack.c.bf16 %v292_v42, %v291_v41 }
  0x2f   :  { %565 = vmatpush3.bf16.msra.mxu0 %v564_v22 }
  0x30   :  { %566 = vmatprep.subr.bf16.mxu0 %v679_v0 }
  0x31   :  { %586 = vmatpush3.bf16.msra.mxu1 %v585_v44  ;;  %v293_v44 = vld [vmem:[#allocation2 + $0x160] sm:$0xff] }
  0x32   :  { %587 = vmatprep.subr.bf16.mxu1 %v679_v0  ;;  %v612_v46 = vpack.c.bf16 %v294_v45, %v293_v44 }
  0x33   :  { %568 = vmatpush3.bf16.msra.mxu0 %v567_v25 }
  0x34   :  { %593 = vmatprep.subr.bf16.mxu0 %v679_v0 }
  0x35   :  { %589 = vmatpush3.bf16.msra.mxu1 %v588_v48  ;;  %v296_v48 = vld [vmem:[#allocation2 + $0x178] sm:$0xff] }
  0x36   :  { %473 = vmatmul.mubr.f32.vlgmr.msra.gmra.mrb[0].mxu0 %v724_v26  ;;  %590 = vmatprep.subr.bf16.mxu1 %v679_v0  ;;  %v615_v49 = vpack.c.bf16 %v296_v48, %v295_v47 }
  0x37   :  { %542 = vmatprep.mubr.msk.f32.mxu0 %vm680_vm0, %v681_v1  ;;  %595 = vmatpush3.bf16.msra.mxu0 %v594_v29 }
  0x38   :  { %596 = vmatprep.subr.bf16.mxu0 %v679_v0 }
  0x39   :  { %592 = vmatpush3.bf16.msra.mxu1 %v591_v50  ;;  %v170_v50 = vld [vmem:[#allocation2 + $0x188] sm:$0xff] }
  0x3a   :  { %v174_v51 = vrot.slane %v170_v50, %v46_v53 }
  0x3b   :  { %598 = vmatpush3.bf16.msra.mxu0 %v597_v32 }
  0x3c   :  { %599 = vmatprep.subr.bf16.mxu0 %v679_v0 }
  0x3f   :  { %601 = vmatpush3.bf16.msra.mxu0 %v600_v35 }
  0x40   :  { %602 = vmatprep.subr.bf16.mxu0 %v679_v0 }
 0x109   :  { %v114_v56 = vpop.f32.mrb[0].mxu0 }
 0x10a   :  { %v115_v57 = vadd.f32 %v114_v56, %v47_v55  ;;  %v474_v58 = vpop.f32.mrb[1].mxu0 }
 0x10c   :  { %v118_v59 = vrot.slane %v115_v57, 4 }
 0x10e   :  { %v119_v60 = vadd.f32 %v118_v59, %v115_v57 }
 0x110   :  { %v120_v61 = vrot.slane %v119_v60, 2 }
 0x112   :  { %v121_v62 = vadd.f32 %v120_v61, %v119_v60 }
 0x114   :  { %v122_v63 = vrot.slane %v121_v62, 1 }
 0x116   :  { %v123_v1 = vadd.f32 %v122_v63, %v121_v62 }
 0x118   :  { %v124_v2 = vmul.f32 0.125, %v123_v1 }
 0x11a   :  { %v125_v3 = vsub.f32 %v115_v57, %v124_v2 }
 0x11c   :  { %v126_v4 = vmul.f32 %v125_v3, %v125_v3 }
 0x11e   :  { %v127_v5 = vrot.slane %v126_v4, 4 }
 0x120   :  { %v128_v6 = vadd.f32 %v127_v5, %v126_v4 }
 0x122   :  { %v129_v7 = vrot.slane %v128_v6, 2 }
 0x124   :  { %v130_v8 = vadd.f32 %v129_v7, %v128_v6 }
 0x126   :  { %v131_v9 = vrot.slane %v130_v8, 1 }
 0x128   :  { %v132_v10 = vadd.f32 %v131_v9, %v130_v8 }
 0x12a   :  { %v133_v11 = vmul.f32 0.125, %v132_v10 }
 0x12c   :  { %v134_v12 = vadd.f32 1e-05, %v133_v11 }
 0x12e   :  { %624 = vrsqrt.f32 %v134_v12 }
 0x138   :  { %v625_v13 = vpop.eup %624 }
 0x139   :  { %v136_v14 = vmul.f32 %v625_v13, %v43_v54 }
 0x13b   :  { %v137_v16 = vmul.f32 %v136_v14, %v124_v2  ;;  %v145_v18 = vrot.slane %v136_v14, %v144_v15 }
 0x13d   :  { %v139_v17 = vrot.slane %v137_v16, 7  ;;  %v146_v21 = vmul.f32 %v145_v18, %v115_v57 }
 0x13f   :  { %v141_v20 = vsub.f32 %v43_v54, %v139_v17 }
 0x141   :  { %v150_v22 = vrot.slane %v141_v20, %v149_v19 }
 0x143   :  { %v151_v23 = vadd.f32 %v150_v22, %v146_v21  ;;  %v388_v22 = vld [vmem:[#allocation2 + $0x190] ss:$0 sm:$0xff] }
 0x145   :  { %v152_v24 = vmax.f32 %v151_v23, 0.0 }
 0x147   :  { %v748_v25 = vadd.f32 %v152_v24, %v724_v26  ;;  %v287_v26 = vld [vmem:[#allocation2 + $0x130] sm:$0xff] }
 0x148   :  { %v603_v37 = vpack.c.bf16 %v288_v36, %v287_v26 }
 0x149   :  { %508 = vmatmul.mubr.f32.vlgmr.msra.gmra.mrb[0].mxu1 %v748_v25 }
 0x14a   :  { %604 = vmatpush3.bf16.msra.mxu0 %v603_v37 }
 0x14b   :  { %605 = vmatprep.subr.bf16.mxu0 %v679_v0 }
 0x14e   :  { %607 = vmatpush3.bf16.msra.mxu0 %v606_v40 }
 0x14f   :  { %608 = vmatprep.subr.bf16.mxu0 %v679_v0 }
 0x152   :  { %610 = vmatpush3.bf16.msra.mxu0 %v609_v43 }
 0x153   :  { %611 = vmatprep.subr.bf16.mxu0 %v679_v0 }
 0x156   :  { %613 = vmatpush3.bf16.msra.mxu0 %v612_v46 }
 0x157   :  { %614 = vmatprep.subr.bf16.mxu0 %v679_v0 }
 0x15a   :  { %616 = vmatpush3.bf16.msra.mxu0 %v615_v49 }
 0x21c   :  { %v241_v54 = vpop.f32.mrb[0].mxu1 }
 0x21d   :  { %v242_v55 = vadd.f32 %v241_v54, %v174_v51  ;;  %v509_v56 = vpop.f32.mrb[1].mxu1 }
 0x21f   :  { %v245_v57 = vrot.slane %v242_v55, 4 }
 0x221   :  { %v246_v58 = vadd.f32 %v245_v57, %v242_v55 }
 0x223   :  { %v247_v59 = vrot.slane %v246_v58, 2 }
 0x225   :  { %v248_v60 = vadd.f32 %v247_v59, %v246_v58 }
 0x227   :  { %v249_v61 = vrot.slane %v248_v60, 1 }
 0x229   :  { %v250_v62 = vadd.f32 %v249_v61, %v248_v60 }
 0x22b   :  { %v251_v63 = vmul.f32 0.125, %v250_v62 }
 0x22d   :  { %v252_v1 = vsub.f32 %v242_v55, %v251_v63 }
 0x22f   :  { %v253_v2 = vmul.f32 %v252_v1, %v252_v1 }
 0x231   :  { %v254_v3 = vrot.slane %v253_v2, 4 }
 0x233   :  { %v255_v4 = vadd.f32 %v254_v3, %v253_v2 }
 0x235   :  { %v256_v0 = vrot.slane %v255_v4, 2 }
 0x237   :  { %v257_v5 = vadd.f32 %v256_v0, %v255_v4 }
 0x239   :  { %v258_v6 = vrot.slane %v257_v5, 1 }
 0x23b   :  { %v259_v7 = vadd.f32 %v258_v6, %v257_v5 }
 0x23d   :  { %v260_v8 = vmul.f32 0.125, %v259_v7 }
 0x23f   :  { %v261_v53 = vadd.f32 1e-05, %v260_v8 }
 0x241   :  { %626 = vrsqrt.f32 %v261_v53 }
 0x24b   :  { %v627_v9 = vpop.eup %626 }
 0x24c   :  { %v263_v10 = vmul.f32 %v627_v9, %v170_v50 }
 0x24e   :  { %v264_v11 = vmul.f32 %v263_v10, %v251_v63  ;;  %v272_v13 = vrot.slane %v263_v10, %v144_v15 }
 0x250   :  { %v266_v12 = vrot.slane %v264_v11, 7  ;;  %v273_v16 = vmul.f32 %v272_v13, %v242_v55 }
 0x252   :  { %v268_v14 = vsub.f32 %v170_v50, %v266_v12 }
 0x254   :  { %v277_v17 = vrot.slane %v268_v14, %v149_v19 }
 0x256   :  { %v278_v18 = vadd.f32 %v277_v17, %v273_v16 }
 0x258   :  { %v279_v20 = vmax.f32 %v278_v18, 0.0 }
 0x25a   :  { %v280_v21 = vadd.f32 %v279_v20, %v748_v25 }
 0x25c   :  { %543 = vmatmul.mubr.f32.vlgmr.msra.gmra.mrb[2].mxu0 %v280_v21 }
 0x32f   :  { %v368_v23 = vpop.f32.mrb[2].mxu0 }
 0x330   :  { %v369_v24 = vadd.f32 %v388_v22, %v368_v23  ;;  %v544_v27 = vpop.f32.mrb[3].mxu0 }
 0x332   :  { %372 = vst [vmem:[#allocation5] sm:$0xff] %v369_v24 }
 0x333   :  { %661 = shalt.err (!%p658_p12)
}
 0x334   :  { %s662_s28 = scalar_lea.hbm %s779_s2, 128 }
 0x335   :  { %p663_p13 = scmp.ne.s32.totalorder %s779_s2, %s662_s28  ;;  %p666_p0 = scmp.lt.u32.totalorder %s662_s28, %s779_s2 }
 0x337   :  { %p668_p1 = pnand %p666_p0, %p663_p13 }
 0x339   :  { %671 = shalt.err (!%p668_p1)
}
 0x33a   :  { %382 = dma.vmem_to_hbm [thread:$0]  %s380_s24, 128, %s779_s2, [#allocation4]  }
 0x33b   :  { %674 = dma.done.wait [#allocation4], 128  }
 0x33c   :  { %675 = vsyncadd [#allocation4], 4294967168 }
 0x33d   :  { %386 = vsyncpa [#allocation3], 1 }
 0x33e   :  { %387 = vsyncpa [#allocation4], 1 }

</bundles_post_ra>
